<compile_context>
chip_gen: v5e
topology: v5e:2x2
jax: 0.10.0
libtpu: 0.0.40
codegen_flags: <defaults>
</compile_context>

<pallas_src>
import jax
import jax.numpy as jnp
from jax.experimental import pallas as pl
from jax.experimental.pallas import tpu as pltpu

ROWS_PER_STEP = 8  # f32 sublane tile -> dense (8, 128) output stores

# Budget for keeping BOTH embedding tables resident in VMEM.  Conservative for
# v7x (64 MiB physical / 32 MiB default scoped limit per TensorCore), leaving
# headroom for double-buffered output blocks and compiler scratch.
_VMEM_TABLE_BUDGET_BYTES = 24 * 1024 * 1024


# -----------------------------------------------------------------------------
# Primary path: fused 4-way gather, tables resident in VMEM.
# -----------------------------------------------------------------------------
def _gather_block(table_ref, idx_ref, base):
    """Gather ROWS_PER_STEP rows from a VMEM-resident table into one dense block."""
    rows = [
        table_ref[pl.ds(idx_ref[base + r], 1), :] for r in range(ROWS_PER_STEP)
    ]
    return jnp.concatenate(rows, axis=0)  # (ROWS_PER_STEP, E) dense store


def _fused_gather_kernel(uid_ref, pid_ref, nid_ref, sid_ref,   # scalar prefetch (SMEM)
                         utab_ref, itab_ref,                    # tables (VMEM resident)
                         uout_ref, pout_ref, nout_ref, sout_ref):
    base = pl.program_id(0) * ROWS_PER_STEP
    uout_ref[...] = _gather_block(utab_ref, uid_ref, base)
    pout_ref[...] = _gather_block(itab_ref, pid_ref, base)
    nout_ref[...] = _gather_block(itab_ref, nid_ref, base)
    sout_ref[...] = _gather_block(itab_ref, sid_ref, base)


def _pad_indices(idx, padded_len):
    pad = padded_len - idx.shape[0]
    if pad:
        idx = jnp.concatenate([idx, jnp.zeros((pad,), idx.dtype)])
    return idx


@jax.jit
def fused_gather(embed_user, embed_item, u_idx, p_idx, n_idx, s_idx):
    """Single Pallas call computing U[u_idx], V[p_idx], V[n_idx], V[s_idx]."""
    B = u_idx.shape[0]
    E = embed_user.shape[1]
    num_steps = pl.cdiv(B, ROWS_PER_STEP)
    Bp = num_steps * ROWS_PER_STEP

    to_i32 = lambda a: _pad_indices(a.astype(jnp.int32), Bp)
    u_idx, p_idx, n_idx, s_idx = (to_i32(a) for a in (u_idx, p_idx, n_idx, s_idx))

    table_spec = pl.BlockSpec(memory_space=pltpu.MemorySpace.VMEM)  # whole table in VMEM
    out_block = pl.BlockSpec((ROWS_PER_STEP, E), lambda i, *_: (i, 0))

    outs = pl.pallas_call(
        _fused_gather_kernel,
        out_shape=tuple(
            jax.ShapeDtypeStruct((Bp, E), embed_user.dtype) for _ in range(4)
        ),
        grid_spec=pltpu.PrefetchScalarGridSpec(
            num_scalar_prefetch=4,
            grid=(num_steps,),
            in_specs=[table_spec, table_spec],
            out_specs=(out_block, out_block, out_block, out_block),
        ),
        compiler_params=pltpu.CompilerParams(
            dimension_semantics=("parallel",),  # independent blocks -> 2 TCs on v7x
        ),
    )(u_idx, p_idx, n_idx, s_idx, embed_user, embed_item)

    user_emb, pos_emb, neg_emb, soc_emb = (o[:B] for o in outs)
    return user_emb, pos_emb, neg_emb, soc_emb


# -----------------------------------------------------------------------------
# Fallback path for tables too large to keep resident in VMEM:
# data-dependent BlockSpec row gather with deeper (3-buffer) pipelining.
# -----------------------------------------------------------------------------
def _gather_row_kernel(idx_ref, table_ref, out_ref):
    out_ref[...] = table_ref[...]


def gather_rows_hbm(table: jax.Array, indices: jax.Array) -> jax.Array:
    R, E = table.shape
    B = indices.shape[0]
    table3 = table.reshape(R, 1, E)  # last two dims equal full dims -> legal block
    out = pl.pallas_call(
        _gather_row_kernel,
        out_shape=jax.ShapeDtypeStruct((B, 1, E), table.dtype),
        grid_spec=pltpu.PrefetchScalarGridSpec(
            num_scalar_prefetch=1,
            grid=(B,),
            in_specs=[
                pl.BlockSpec((1, 1, E), lambda i, idx: (idx[i], 0, 0),
                             pipeline_mode=pl.Buffered(3)),
            ],
            out_specs=pl.BlockSpec((1, 1, E), lambda i, idx: (i, 0, 0)),
        ),
        compiler_params=pltpu.CompilerParams(
            dimension_semantics=("arbitrary",),
        ),
    )(indices.astype(jnp.int32), table3)
    return out.reshape(B, E)


# -----------------------------------------------------------------------------
# Model wrapper (mirrors the PyTorch module's parameters + forward).
# -----------------------------------------------------------------------------
def xavier_uniform(key, shape, dtype=jnp.float32):
    fan_in, fan_out = shape[0], shape[1]
    bound = (6.0 / (fan_in + fan_out)) ** 0.5
    return jax.random.uniform(key, shape, dtype=dtype, minval=-bound, maxval=bound)


class SBPRPallas:
    """JAX/Pallas port of SBPR's parameters + forward."""

    def __init__(self, num_users, num_items, embed_size, key):
        ku, ki = jax.random.split(key)
        self.embed_user = xavier_uniform(ku, (num_users, embed_size))
        self.embed_item = xavier_uniform(ki, (num_items, embed_size))
        self.batch_soc_items = None
        self.soc_item_embeddings = None

    def forward(self, batch_user, batch_pos_item, batch_neg_item,
                batch_soc_items=None):
        if batch_soc_items is None:
            batch_soc_items = self.batch_soc_items  # mirrors torch attribute use

        table_bytes = (self.embed_user.size + self.embed_item.size) * \
            jnp.dtype(self.embed_user.dtype).itemsize
        if table_bytes <= _VMEM_TABLE_BUDGET_BYTES:
            user_emb, pos_emb, neg_emb, soc_emb = fused_gather(
                self.embed_user, self.embed_item,
                batch_user, batch_pos_item, batch_neg_item, batch_soc_items)
        else:
            # TODO(synk): could also fuse these into one multi-output call.
            user_emb = gather_rows_hbm(self.embed_user, batch_user)
            pos_emb = gather_rows_hbm(self.embed_item, batch_pos_item)
            neg_emb = gather_rows_hbm(self.embed_item, batch_neg_item)
            soc_emb = gather_rows_hbm(self.embed_item, batch_soc_items)

        # mirrors `self.soc_item_embeddings = V[self.batch_soc_items, :]`
        # (assignment kept outside the jitted/traced computation).
        self.soc_item_embeddings = soc_emb
        return user_emb, pos_emb, neg_emb


if __name__ == "__main__":
    num_users, num_items, embed_size, batch = 64, 96, 128, 8

    key = jax.random.PRNGKey(0)
    k_model, k_u, k_p, k_n, k_s = jax.random.split(key, 5)

    model = SBPRPallas(num_users, num_items, embed_size, k_model)

    batch_user = jax.random.randint(k_u, (batch,), 0, num_users, dtype=jnp.int32)
    batch_pos = jax.random.randint(k_p, (batch,), 0, num_items, dtype=jnp.int32)
    batch_neg = jax.random.randint(k_n, (batch,), 0, num_items, dtype=jnp.int32)
    batch_soc = jax.random.randint(k_s, (batch,), 0, num_items, dtype=jnp.int32)

    # torch-style: soc indices set on the module, forward takes 3 args
    model.batch_soc_items = batch_soc
    user_emb, pos_emb, neg_emb = model.forward(batch_user, batch_pos, batch_neg)
    jax.block_until_ready((user_emb, pos_emb, neg_emb, model.soc_item_embeddings))

    # sanity check against plain-JAX indexing semantics
    assert jnp.allclose(user_emb, model.embed_user[batch_user, :])
    assert jnp.allclose(pos_emb, model.embed_item[batch_pos, :])
    assert jnp.allclose(neg_emb, model.embed_item[batch_neg, :])
    assert jnp.allclose(model.soc_item_embeddings, model.embed_item[batch_soc, :])

    # exercise the padding path (batch not a multiple of ROWS_PER_STEP)
    u5, p5, n5 = model.forward(batch_user[:5], batch_pos[:5], batch_neg[:5],
                               batch_soc_items=batch_soc[:5])
    jax.block_until_ready((u5, p5, n5, model.soc_item_embeddings))
    assert u5.shape == (5, embed_size)
    assert jnp.allclose(u5, model.embed_user[batch_user[:5], :])
    assert jnp.allclose(p5, model.embed_item[batch_pos[:5], :])
    assert jnp.allclose(n5, model.embed_item[batch_neg[:5], :])
    assert jnp.allclose(model.soc_item_embeddings, model.embed_item[batch_soc[:5], :])

    print("KERNEL_OK")
</pallas_src>

<mosaic_0001>
module attributes {stable_mosaic.version = 11 : i64} {
  func.func @_fused_gather_kernel(%arg0: i32, %arg1: memref<8xi32, #tpu.memory_space<smem>>, %arg2: memref<8xi32, #tpu.memory_space<smem>>, %arg3: memref<8xi32, #tpu.memory_space<smem>>, %arg4: memref<8xi32, #tpu.memory_space<smem>>, %arg5: memref<64x128xf32, #tpu.memory_space<vmem>>, %arg6: memref<96x128xf32, #tpu.memory_space<vmem>>, %arg7: memref<8x128xf32, #tpu.memory_space<vmem>>, %arg8: memref<8x128xf32, #tpu.memory_space<vmem>>, %arg9: memref<8x128xf32, #tpu.memory_space<vmem>>, %arg10: memref<8x128xf32, #tpu.memory_space<vmem>>) attributes {dimension_semantics = [#tpu.dimension_semantics<parallel>], iteration_bounds = array<i64: 1>, scalar_prefetch = 4 : i64, scratch_operands = 0 : i64, tpu.core_type = #tpu.core_type<tc>, window_params = [{pipeline_mode = #tpu.pipeline_mode<synchronous>, transform_indices = @transform_0, window_bounds = array<i64: 64, 128>}, {pipeline_mode = #tpu.pipeline_mode<synchronous>, transform_indices = @transform_1, window_bounds = array<i64: 96, 128>}, {transform_indices = @transform_2, window_bounds = array<i64: 8, 128>}, {transform_indices = @transform_3, window_bounds = array<i64: 8, 128>}, {transform_indices = @transform_4, window_bounds = array<i64: 8, 128>}, {transform_indices = @transform_5, window_bounds = array<i64: 8, 128>}]} {
    %c8_i32 = arith.constant 8 : i32
    %0 = arith.muli %arg0, %c8_i32 : i32
    %c0_i32 = arith.constant 0 : i32
    %1 = arith.addi %0, %c0_i32 : i32
    %2 = arith.index_cast %1 : i32 to index
    %3 = memref.load %arg1[%2] : memref<8xi32, #tpu.memory_space<smem>>
    %4 = arith.index_cast %3 : i32 to index
    %c0 = arith.constant 0 : index
    %5 = vector.load %arg5[%4, %c0] : memref<64x128xf32, #tpu.memory_space<vmem>>, vector<1x128xf32>
    %c1_i32 = arith.constant 1 : i32
    %6 = arith.addi %0, %c1_i32 : i32
    %7 = arith.index_cast %6 : i32 to index
    %8 = memref.load %arg1[%7] : memref<8xi32, #tpu.memory_space<smem>>
    %9 = arith.index_cast %8 : i32 to index
    %c0_0 = arith.constant 0 : index
    %10 = vector.load %arg5[%9, %c0_0] : memref<64x128xf32, #tpu.memory_space<vmem>>, vector<1x128xf32>
    %c2_i32 = arith.constant 2 : i32
    %11 = arith.addi %0, %c2_i32 : i32
    %12 = arith.index_cast %11 : i32 to index
    %13 = memref.load %arg1[%12] : memref<8xi32, #tpu.memory_space<smem>>
    %14 = arith.index_cast %13 : i32 to index
    %c0_1 = arith.constant 0 : index
    %15 = vector.load %arg5[%14, %c0_1] : memref<64x128xf32, #tpu.memory_space<vmem>>, vector<1x128xf32>
    %c3_i32 = arith.constant 3 : i32
    %16 = arith.addi %0, %c3_i32 : i32
    %17 = arith.index_cast %16 : i32 to index
    %18 = memref.load %arg1[%17] : memref<8xi32, #tpu.memory_space<smem>>
    %19 = arith.index_cast %18 : i32 to index
    %c0_2 = arith.constant 0 : index
    %20 = vector.load %arg5[%19, %c0_2] : memref<64x128xf32, #tpu.memory_space<vmem>>, vector<1x128xf32>
    %c4_i32 = arith.constant 4 : i32
    %21 = arith.addi %0, %c4_i32 : i32
    %22 = arith.index_cast %21 : i32 to index
    %23 = memref.load %arg1[%22] : memref<8xi32, #tpu.memory_space<smem>>
    %24 = arith.index_cast %23 : i32 to index
    %c0_3 = arith.constant 0 : index
    %25 = vector.load %arg5[%24, %c0_3] : memref<64x128xf32, #tpu.memory_space<vmem>>, vector<1x128xf32>
    %c5_i32 = arith.constant 5 : i32
    %26 = arith.addi %0, %c5_i32 : i32
    %27 = arith.index_cast %26 : i32 to index
    %28 = memref.load %arg1[%27] : memref<8xi32, #tpu.memory_space<smem>>
    %29 = arith.index_cast %28 : i32 to index
    %c0_4 = arith.constant 0 : index
    %30 = vector.load %arg5[%29, %c0_4] : memref<64x128xf32, #tpu.memory_space<vmem>>, vector<1x128xf32>
    %c6_i32 = arith.constant 6 : i32
    %31 = arith.addi %0, %c6_i32 : i32
    %32 = arith.index_cast %31 : i32 to index
    %33 = memref.load %arg1[%32] : memref<8xi32, #tpu.memory_space<smem>>
    %34 = arith.index_cast %33 : i32 to index
    %c0_5 = arith.constant 0 : index
    %35 = vector.load %arg5[%34, %c0_5] : memref<64x128xf32, #tpu.memory_space<vmem>>, vector<1x128xf32>
    %c7_i32 = arith.constant 7 : i32
    %36 = arith.addi %0, %c7_i32 : i32
    %37 = arith.index_cast %36 : i32 to index
    %38 = memref.load %arg1[%37] : memref<8xi32, #tpu.memory_space<smem>>
    %39 = arith.index_cast %38 : i32 to index
    %c0_6 = arith.constant 0 : index
    %40 = vector.load %arg5[%39, %c0_6] : memref<64x128xf32, #tpu.memory_space<vmem>>, vector<1x128xf32>
    %41 = tpu.concatenate %5, %10, %15, %20, %25, %30, %35, %40 in 0 : vector<1x128xf32>, vector<1x128xf32>, vector<1x128xf32>, vector<1x128xf32>, vector<1x128xf32>, vector<1x128xf32>, vector<1x128xf32>, vector<1x128xf32> -> vector<8x128xf32>
    %c0_7 = arith.constant 0 : index
    %c0_8 = arith.constant 0 : index
    %42 = vector.load %arg7[%c0_7, %c0_8] : memref<8x128xf32, #tpu.memory_space<vmem>>, vector<8x128xf32>
    tpu.vector_store %arg7[%c0_7, %c0_8], %41 {strides = array<i32>} : memref<8x128xf32, #tpu.memory_space<vmem>>, vector<8x128xf32>,
    %c0_i32_9 = arith.constant 0 : i32
    %43 = arith.addi %0, %c0_i32_9 : i32
    %44 = arith.index_cast %43 : i32 to index
    %45 = memref.load %arg2[%44] : memref<8xi32, #tpu.memory_space<smem>>
    %46 = arith.index_cast %45 : i32 to index
    %c0_10 = arith.constant 0 : index
    %47 = vector.load %arg6[%46, %c0_10] : memref<96x128xf32, #tpu.memory_space<vmem>>, vector<1x128xf32>
    %c1_i32_11 = arith.constant 1 : i32
    %48 = arith.addi %0, %c1_i32_11 : i32
    %49 = arith.index_cast %48 : i32 to index
    %50 = memref.load %arg2[%49] : memref<8xi32, #tpu.memory_space<smem>>
    %51 = arith.index_cast %50 : i32 to index
    %c0_12 = arith.constant 0 : index
    %52 = vector.load %arg6[%51, %c0_12] : memref<96x128xf32, #tpu.memory_space<vmem>>, vector<1x128xf32>
    %c2_i32_13 = arith.constant 2 : i32
    %53 = arith.addi %0, %c2_i32_13 : i32
    %54 = arith.index_cast %53 : i32 to index
    %55 = memref.load %arg2[%54] : memref<8xi32, #tpu.memory_space<smem>>
    %56 = arith.index_cast %55 : i32 to index
    %c0_14 = arith.constant 0 : index
    %57 = vector.load %arg6[%56, %c0_14] : memref<96x128xf32, #tpu.memory_space<vmem>>, vector<1x128xf32>
    %c3_i32_15 = arith.constant 3 : i32
    %58 = arith.addi %0, %c3_i32_15 : i32
    %59 = arith.index_cast %58 : i32 to index
    %60 = memref.load %arg2[%59] : memref<8xi32, #tpu.memory_space<smem>>
    %61 = arith.index_cast %60 : i32 to index
    %c0_16 = arith.constant 0 : index
    %62 = vector.load %arg6[%61, %c0_16] : memref<96x128xf32, #tpu.memory_space<vmem>>, vector<1x128xf32>
    %c4_i32_17 = arith.constant 4 : i32
    %63 = arith.addi %0, %c4_i32_17 : i32
    %64 = arith.index_cast %63 : i32 to index
    %65 = memref.load %arg2[%64] : memref<8xi32, #tpu.memory_space<smem>>
    %66 = arith.index_cast %65 : i32 to index
    %c0_18 = arith.constant 0 : index
    %67 = vector.load %arg6[%66, %c0_18] : memref<96x128xf32, #tpu.memory_space<vmem>>, vector<1x128xf32>
    %c5_i32_19 = arith.constant 5 : i32
    %68 = arith.addi %0, %c5_i32_19 : i32
    %69 = arith.index_cast %68 : i32 to index
    %70 = memref.load %arg2[%69] : memref<8xi32, #tpu.memory_space<smem>>
    %71 = arith.index_cast %70 : i32 to index
    %c0_20 = arith.constant 0 : index
    %72 = vector.load %arg6[%71, %c0_20] : memref<96x128xf32, #tpu.memory_space<vmem>>, vector<1x128xf32>
    %c6_i32_21 = arith.constant 6 : i32
    %73 = arith.addi %0, %c6_i32_21 : i32
    %74 = arith.index_cast %73 : i32 to index
    %75 = memref.load %arg2[%74] : memref<8xi32, #tpu.memory_space<smem>>
    %76 = arith.index_cast %75 : i32 to index
    %c0_22 = arith.constant 0 : index
    %77 = vector.load %arg6[%76, %c0_22] : memref<96x128xf32, #tpu.memory_space<vmem>>, vector<1x128xf32>
    %c7_i32_23 = arith.constant 7 : i32
    %78 = arith.addi %0, %c7_i32_23 : i32
    %79 = arith.index_cast %78 : i32 to index
    %80 = memref.load %arg2[%79] : memref<8xi32, #tpu.memory_space<smem>>
    %81 = arith.index_cast %80 : i32 to index
    %c0_24 = arith.constant 0 : index
    %82 = vector.load %arg6[%81, %c0_24] : memref<96x128xf32, #tpu.memory_space<vmem>>, vector<1x128xf32>
    %83 = tpu.concatenate %47, %52, %57, %62, %67, %72, %77, %82 in 0 : vector<1x128xf32>, vector<1x128xf32>, vector<1x128xf32>, vector<1x128xf32>, vector<1x128xf32>, vector<1x128xf32>, vector<1x128xf32>, vector<1x128xf32> -> vector<8x128xf32>
    %c0_25 = arith.constant 0 : index
    %c0_26 = arith.constant 0 : index
    %84 = vector.load %arg8[%c0_25, %c0_26] : memref<8x128xf32, #tpu.memory_space<vmem>>, vector<8x128xf32>
    tpu.vector_store %arg8[%c0_25, %c0_26], %83 {strides = array<i32>} : memref<8x128xf32, #tpu.memory_space<vmem>>, vector<8x128xf32>,
    %c0_i32_27 = arith.constant 0 : i32
    %85 = arith.addi %0, %c0_i32_27 : i32
    %86 = arith.index_cast %85 : i32 to index
    %87 = memref.load %arg3[%86] : memref<8xi32, #tpu.memory_space<smem>>
    %88 = arith.index_cast %87 : i32 to index
    %c0_28 = arith.constant 0 : index
    %89 = vector.load %arg6[%88, %c0_28] : memref<96x128xf32, #tpu.memory_space<vmem>>, vector<1x128xf32>
    %c1_i32_29 = arith.constant 1 : i32
    %90 = arith.addi %0, %c1_i32_29 : i32
    %91 = arith.index_cast %90 : i32 to index
    %92 = memref.load %arg3[%91] : memref<8xi32, #tpu.memory_space<smem>>
    %93 = arith.index_cast %92 : i32 to index
    %c0_30 = arith.constant 0 : index
    %94 = vector.load %arg6[%93, %c0_30] : memref<96x128xf32, #tpu.memory_space<vmem>>, vector<1x128xf32>
    %c2_i32_31 = arith.constant 2 : i32
    %95 = arith.addi %0, %c2_i32_31 : i32
    %96 = arith.index_cast %95 : i32 to index
    %97 = memref.load %arg3[%96] : memref<8xi32, #tpu.memory_space<smem>>
    %98 = arith.index_cast %97 : i32 to index
    %c0_32 = arith.constant 0 : index
    %99 = vector.load %arg6[%98, %c0_32] : memref<96x128xf32, #tpu.memory_space<vmem>>, vector<1x128xf32>
    %c3_i32_33 = arith.constant 3 : i32
    %100 = arith.addi %0, %c3_i32_33 : i32
    %101 = arith.index_cast %100 : i32 to index
    %102 = memref.load %arg3[%101] : memref<8xi32, #tpu.memory_space<smem>>
    %103 = arith.index_cast %102 : i32 to index
    %c0_34 = arith.constant 0 : index
    %104 = vector.load %arg6[%103, %c0_34] : memref<96x128xf32, #tpu.memory_space<vmem>>, vector<1x128xf32>
    %c4_i32_35 = arith.constant 4 : i32
    %105 = arith.addi %0, %c4_i32_35 : i32
    %106 = arith.index_cast %105 : i32 to index
    %107 = memref.load %arg3[%106] : memref<8xi32, #tpu.memory_space<smem>>
    %108 = arith.index_cast %107 : i32 to index
    %c0_36 = arith.constant 0 : index
    %109 = vector.load %arg6[%108, %c0_36] : memref<96x128xf32, #tpu.memory_space<vmem>>, vector<1x128xf32>
    %c5_i32_37 = arith.constant 5 : i32
    %110 = arith.addi %0, %c5_i32_37 : i32
    %111 = arith.index_cast %110 : i32 to index
    %112 = memref.load %arg3[%111] : memref<8xi32, #tpu.memory_space<smem>>
    %113 = arith.index_cast %112 : i32 to index
    %c0_38 = arith.constant 0 : index
    %114 = vector.load %arg6[%113, %c0_38] : memref<96x128xf32, #tpu.memory_space<vmem>>, vector<1x128xf32>
    %c6_i32_39 = arith.constant 6 : i32
    %115 = arith.addi %0, %c6_i32_39 : i32
    %116 = arith.index_cast %115 : i32 to index
    %117 = memref.load %arg3[%116] : memref<8xi32, #tpu.memory_space<smem>>
    %118 = arith.index_cast %117 : i32 to index
    %c0_40 = arith.constant 0 : index
    %119 = vector.load %arg6[%118, %c0_40] : memref<96x128xf32, #tpu.memory_space<vmem>>, vector<1x128xf32>
    %c7_i32_41 = arith.constant 7 : i32
    %120 = arith.addi %0, %c7_i32_41 : i32
    %121 = arith.index_cast %120 : i32 to index
    %122 = memref.load %arg3[%121] : memref<8xi32, #tpu.memory_space<smem>>
    %123 = arith.index_cast %122 : i32 to index
    %c0_42 = arith.constant 0 : index
    %124 = vector.load %arg6[%123, %c0_42] : memref<96x128xf32, #tpu.memory_space<vmem>>, vector<1x128xf32>
    %125 = tpu.concatenate %89, %94, %99, %104, %109, %114, %119, %124 in 0 : vector<1x128xf32>, vector<1x128xf32>, vector<1x128xf32>, vector<1x128xf32>, vector<1x128xf32>, vector<1x128xf32>, vector<1x128xf32>, vector<1x128xf32> -> vector<8x128xf32>
    %c0_43 = arith.constant 0 : index
    %c0_44 = arith.constant 0 : index
    %126 = vector.load %arg9[%c0_43, %c0_44] : memref<8x128xf32, #tpu.memory_space<vmem>>, vector<8x128xf32>
    tpu.vector_store %arg9[%c0_43, %c0_44], %125 {strides = array<i32>} : memref<8x128xf32, #tpu.memory_space<vmem>>, vector<8x128xf32>,
    %c0_i32_45 = arith.constant 0 : i32
    %127 = arith.addi %0, %c0_i32_45 : i32
    %128 = arith.index_cast %127 : i32 to index
    %129 = memref.load %arg4[%128] : memref<8xi32, #tpu.memory_space<smem>>
    %130 = arith.index_cast %129 : i32 to index
    %c0_46 = arith.constant 0 : index
    %131 = vector.load %arg6[%130, %c0_46] : memref<96x128xf32, #tpu.memory_space<vmem>>, vector<1x128xf32>
    %c1_i32_47 = arith.constant 1 : i32
    %132 = arith.addi %0, %c1_i32_47 : i32
    %133 = arith.index_cast %132 : i32 to index
    %134 = memref.load %arg4[%133] : memref<8xi32, #tpu.memory_space<smem>>
    %135 = arith.index_cast %134 : i32 to index
    %c0_48 = arith.constant 0 : index
    %136 = vector.load %arg6[%135, %c0_48] : memref<96x128xf32, #tpu.memory_space<vmem>>, vector<1x128xf32>
    %c2_i32_49 = arith.constant 2 : i32
    %137 = arith.addi %0, %c2_i32_49 : i32
    %138 = arith.index_cast %137 : i32 to index
    %139 = memref.load %arg4[%138] : memref<8xi32, #tpu.memory_space<smem>>
    %140 = arith.index_cast %139 : i32 to index
    %c0_50 = arith.constant 0 : index
    %141 = vector.load %arg6[%140, %c0_50] : memref<96x128xf32, #tpu.memory_space<vmem>>, vector<1x128xf32>
    %c3_i32_51 = arith.constant 3 : i32
    %142 = arith.addi %0, %c3_i32_51 : i32
    %143 = arith.index_cast %142 : i32 to index
    %144 = memref.load %arg4[%143] : memref<8xi32, #tpu.memory_space<smem>>
    %145 = arith.index_cast %144 : i32 to index
    %c0_52 = arith.constant 0 : index
    %146 = vector.load %arg6[%145, %c0_52] : memref<96x128xf32, #tpu.memory_space<vmem>>, vector<1x128xf32>
    %c4_i32_53 = arith.constant 4 : i32
    %147 = arith.addi %0, %c4_i32_53 : i32
    %148 = arith.index_cast %147 : i32 to index
    %149 = memref.load %arg4[%148] : memref<8xi32, #tpu.memory_space<smem>>
    %150 = arith.index_cast %149 : i32 to index
    %c0_54 = arith.constant 0 : index
    %151 = vector.load %arg6[%150, %c0_54] : memref<96x128xf32, #tpu.memory_space<vmem>>, vector<1x128xf32>
    %c5_i32_55 = arith.constant 5 : i32
    %152 = arith.addi %0, %c5_i32_55 : i32
    %153 = arith.index_cast %152 : i32 to index
    %154 = memref.load %arg4[%153] : memref<8xi32, #tpu.memory_space<smem>>
    %155 = arith.index_cast %154 : i32 to index
    %c0_56 = arith.constant 0 : index
    %156 = vector.load %arg6[%155, %c0_56] : memref<96x128xf32, #tpu.memory_space<vmem>>, vector<1x128xf32>
    %c6_i32_57 = arith.constant 6 : i32
    %157 = arith.addi %0, %c6_i32_57 : i32
    %158 = arith.index_cast %157 : i32 to index
    %159 = memref.load %arg4[%158] : memref<8xi32, #tpu.memory_space<smem>>
    %160 = arith.index_cast %159 : i32 to index
    %c0_58 = arith.constant 0 : index
    %161 = vector.load %arg6[%160, %c0_58] : memref<96x128xf32, #tpu.memory_space<vmem>>, vector<1x128xf32>
    %c7_i32_59 = arith.constant 7 : i32
    %162 = arith.addi %0, %c7_i32_59 : i32
    %163 = arith.index_cast %162 : i32 to index
    %164 = memref.load %arg4[%163] : memref<8xi32, #tpu.memory_space<smem>>
    %165 = arith.index_cast %164 : i32 to index
    %c0_60 = arith.constant 0 : index
    %166 = vector.load %arg6[%165, %c0_60] : memref<96x128xf32, #tpu.memory_space<vmem>>, vector<1x128xf32>
    %167 = tpu.concatenate %131, %136, %141, %146, %151, %156, %161, %166 in 0 : vector<1x128xf32>, vector<1x128xf32>, vector<1x128xf32>, vector<1x128xf32>, vector<1x128xf32>, vector<1x128xf32>, vector<1x128xf32>, vector<1x128xf32> -> vector<8x128xf32>
    %c0_61 = arith.constant 0 : index
    %c0_62 = arith.constant 0 : index
    %168 = vector.load %arg10[%c0_61, %c0_62] : memref<8x128xf32, #tpu.memory_space<vmem>>, vector<8x128xf32>
    tpu.vector_store %arg10[%c0_61, %c0_62], %167 {strides = array<i32>} : memref<8x128xf32, #tpu.memory_space<vmem>>, vector<8x128xf32>,
    return
  }
  func.func @transform_0(%arg0: i32, %arg1: memref<8xi32, #tpu.memory_space<smem>>, %arg2: memref<8xi32, #tpu.memory_space<smem>>, %arg3: memref<8xi32, #tpu.memory_space<smem>>, %arg4: memref<8xi32, #tpu.memory_space<smem>>) -> (i32, i32) {
    %c0_i32 = arith.constant 0 : i32
    %c0_i32_0 = arith.constant 0 : i32
    %c0_i32_1 = arith.constant 0 : i32
    return %c0_i32, %c0_i32_0 : i32, i32
  }
  func.func @transform_1(%arg0: i32, %arg1: memref<8xi32, #tpu.memory_space<smem>>, %arg2: memref<8xi32, #tpu.memory_space<smem>>, %arg3: memref<8xi32, #tpu.memory_space<smem>>, %arg4: memref<8xi32, #tpu.memory_space<smem>>) -> (i32, i32) {
    %c0_i32 = arith.constant 0 : i32
    %c0_i32_0 = arith.constant 0 : i32
    %c0_i32_1 = arith.constant 0 : i32
    return %c0_i32, %c0_i32_0 : i32, i32
  }
  func.func @transform_2(%arg0: i32, %arg1: memref<8xi32, #tpu.memory_space<smem>>, %arg2: memref<8xi32, #tpu.memory_space<smem>>, %arg3: memref<8xi32, #tpu.memory_space<smem>>, %arg4: memref<8xi32, #tpu.memory_space<smem>>) -> (i32, i32) {
    %c0_i32 = arith.constant 0 : i32
    %c0_i32_0 = arith.constant 0 : i32
    return %arg0, %c0_i32 : i32, i32
  }
  func.func @transform_3(%arg0: i32, %arg1: memref<8xi32, #tpu.memory_space<smem>>, %arg2: memref<8xi32, #tpu.memory_space<smem>>, %arg3: memref<8xi32, #tpu.memory_space<smem>>, %arg4: memref<8xi32, #tpu.memory_space<smem>>) -> (i32, i32) {
    %c0_i32 = arith.constant 0 : i32
    %c0_i32_0 = arith.constant 0 : i32
    return %arg0, %c0_i32 : i32, i32
  }
  func.func @transform_4(%arg0: i32, %arg1: memref<8xi32, #tpu.memory_space<smem>>, %arg2: memref<8xi32, #tpu.memory_space<smem>>, %arg3: memref<8xi32, #tpu.memory_space<smem>>, %arg4: memref<8xi32, #tpu.memory_space<smem>>) -> (i32, i32) {
    %c0_i32 = arith.constant 0 : i32
    %c0_i32_0 = arith.constant 0 : i32
    return %arg0, %c0_i32 : i32, i32
  }
  func.func @transform_5(%arg0: i32, %arg1: memref<8xi32, #tpu.memory_space<smem>>, %arg2: memref<8xi32, #tpu.memory_space<smem>>, %arg3: memref<8xi32, #tpu.memory_space<smem>>, %arg4: memref<8xi32, #tpu.memory_space<smem>>) -> (i32, i32) {
    %c0_i32 = arith.constant 0 : i32
    %c0_i32_0 = arith.constant 0 : i32
    return %arg0, %c0_i32 : i32, i32
  }
}

</mosaic_0001>

<bundles_post_ra>
// kernel: fused_gather.1
= control target key start
LH: loop header
LB: loop body
LE: loop exit
PB: predicated region body
PF: predicated region fallthrough
CT: control target
= control target key end

     0   :  { %s645_s15 = smov [#allocation3]   ;;  %s646_s16 = smov [#allocation4]   ;;  %s850_s0 = inlined_call_operand.vmem [shape: s32[8], index: 0, kind: input, shape index: {}]   ;;  %s851_s4 = inlined_call_operand.hbm [shape: f32[64,128], index: 4, kind: input, shape index: {}]   ;;  %s852_s5 = inlined_call_operand.hbm [shape: f32[96,128], index: 5, kind: input, shape index: {}]   ;;  %s853_s6 = inlined_call_operand.hbm [shape: f32[8,128], index: 6, kind: output, shape index: {0}]   ;;  %s854_s7 = inlined_call_operand.hbm [shape: f32[8,128], index: 7, kind: output, shape index: {1}]   ;;  %s855_s8 = inlined_call_operand.hbm [shape: f32[8,128], index: 8, kind: output, shape index: {2}]   ;;  %s856_s9 = inlined_call_operand.hbm [shape: f32[8,128], index: 9, kind: output, shape index: {3}]   ;;  %s857_s1 = inlined_call_operand.vmem [shape: s32[8], index: 1, kind: input, shape index: {}]   ;;  %s858_s2 = inlined_call_operand.vmem [shape: s32[8], index: 2, kind: input, shape index: {}]   ;;  %s859_s3 = inlined_call_operand.vmem [shape: s32[8], index: 3, kind: input, shape index: {}]  }
   0x1   :  { %s16_s11 = sshll.u32 %s850_s0, 4  ;;  %s21_s14 = sshll.u32 %s857_s1, 4  ;;  %s17_s11 = int_to_ptr.vmem [resolvable:$true] %s16_s11  ;;  %s22_s14 = int_to_ptr.vmem [resolvable:$true] %s21_s14 }
   0x2   :  { %19 = dma.vmem_to_smem %s17_s11, 16, %s645_s15, [#allocation2] }
   0x3   :  { %24 = dma.vmem_to_smem %s22_s14, 16, %s646_s16, [#allocation2] }
   0x4   :  { %s26_s19 = sshll.u32 %s858_s2, 4  ;;  %s31_s22 = sshll.u32 %s859_s3, 4  ;;  %s27_s19 = int_to_ptr.vmem [resolvable:$true] %s26_s19  ;;  %s32_s22 = int_to_ptr.vmem [resolvable:$true] %s31_s22 }
   0x5   :  { %s647_s0 = smov [#allocation5]   ;;  %s648_s23 = smov [#allocation6]  }
   0x6   :  { %29 = dma.vmem_to_smem %s27_s19, 16, %s647_s0, [#allocation2] }
   0x7   :  { %34 = dma.vmem_to_smem %s32_s22, 16, %s648_s23, [#allocation2] }
   0x8   :  { %633 = dma.done.wait [#allocation2], 64 }
   0x9   :  { %634 = vsyncadd [#allocation2], 4294967232 }
   0xa   :  { %37 = sfence }
   0xb   :  { %38 = vsyncpa [#allocation8], 0 }
   0xc   :  { %39 = vsyncpa [#allocation11], 0 }
   0xd   :  { %40 = vsyncpa [#allocation9], 0 }
   0xe   :  { %41 = vsyncpa [#allocation14], 0 }
   0xf   :  { %42 = vsyncpa [#allocation17], 0  ;;  %s47_s24 = sshll.u32 %s851_s4, 4  ;;  %s649_s25 = smov [#allocation7]   ;;  %s48_s24 = int_to_ptr.hbm [resolvable:$true] %s47_s24 }
  0x10   :  { %s49_s3 = sshll.u32 %s649_s25, 4  ;;  %s60_s28 = sshll.u32 %s852_s5, 4  ;;  %s50_s3 = int_to_ptr.vmem [resolvable:$true] %s49_s3  ;;  %s61_s28 = int_to_ptr.hbm [resolvable:$true] %s60_s28 }
  0x11   :  { %s650_s29 = smov 128   ;;  %s651_s30 = smov 8  }
  0x12   :  { %55 = dma.hbm_to_vmem [thread:$0]  %s48_s24, 1024, %s50_s3, [#allocation8], %s650_s29, %s650_s29, %s651_s30  }
  0x13   :  { %s652_s10 = smov [#allocation10]  }
  0x14   :  { %s62_s11 = sshll.u32 %s652_s10, 4  ;;  %s63_s11 = int_to_ptr.vmem [resolvable:$true] %s62_s11 }
  0x15   :  { %68 = dma.hbm_to_vmem [thread:$0]  %s61_s28, 1536, %s63_s11, [#allocation11], %s650_s29, %s650_s29, %s651_s30  }
  0x16   :  { %635 = dma.done.wait [#allocation8], 1024  }
  0x17   :  { %636 = vsyncadd [#allocation8], 4294966272 }
  0x18   :  { %637 = dma.done.wait [#allocation11], 1536  }
  0x19   :  { %638 = vsyncadd [#allocation11], 4294965760  ;;  %s145_s4 = sld [smem:[#allocation4]]  ;;  %s653_s13 = smov [#allocation13]   ;;  %vm130_vm0 = vcmask 1040384   ;;  %vm132_vm1 = vcmask 1041408  }
  0x1a   :  { %s408_s12 = sld [smem:[#allocation4 + $0x1]]  ;;  %s725_s14 = sshll.u32 %s653_s13, 4  ;;  %vm134_vm2 = vcmask 1042432   ;;  %vm136_vm3 = vcmask 1043456   ;;  %vm138_vm4 = vcmask 1044480   ;;  %vm140_vm5 = vcmask 1045504   ;;  %s321_s14 = int_to_ptr.vmem [resolvable:$true] %s725_s14 }
  0x1b   :  { %s409_s15 = sld [smem:[#allocation4 + $0x2]]  ;;  %s322_s18 = sshll.u32 %s854_s7, 4  ;;  %vm142_vm6 = vcmask 1046528   ;;  %s731_s18 = int_to_ptr.hbm [resolvable:$true] %s322_s18 }
  0x1c   :  { %s410_s5 = sld [smem:[#allocation4 + $0x3]] }
  0x1d   :  { %s411_s19 = sld [smem:[#allocation4 + $0x4]] }
  0x1e   :  { %s412_s20 = sld [smem:[#allocation4 + $0x5]] }
  0x1f   :  { %s413_s21 = sld [smem:[#allocation4 + $0x6]]  ;;  %s146_s22 = scalar_lea.vmem [#allocation10], %s145_s4 }
  0x20   :  { %v147_v0 = vld [vmem:[%s146_s22] sm:$0x1]  ;;  %s733_s0 = sld [smem:[#allocation4 + $0x7]]  ;;  %s149_s23 = scalar_lea.vmem [#allocation10], %s408_s12 }
  0x21   :  { %v150_v1 = vld [vmem:[%s149_s23] sm:$0x1]  ;;  %s735_s1 = sld [smem:[#allocation3]]  ;;  %s152_s7 = scalar_lea.vmem [#allocation10], %s409_s15 }
  0x22   :  { %v153_v2 = vld [vmem:[%s152_s7] sm:$0x1]  ;;  %v170_v3 = vrot.slane %v150_v1, 7  ;;  %s737_s2 = sld [smem:[#allocation3 + $0x1]]  ;;  %s155_s24 = scalar_lea.vmem [#allocation10], %s410_s5 }
  0x23   :  { %v156_v4 = vld [vmem:[%s155_s24] sm:$0x1]  ;;  %v173_v5 = vrot.slane %v153_v2, 6  ;;  %s739_s25 = sld [smem:[#allocation3 + $0x2]]  ;;  %s158_s3 = scalar_lea.vmem [#allocation10], %s411_s19 }
  0x24   :  { %v159_v6 = vld [vmem:[%s158_s3] sm:$0x1]  ;;  %v176_v7 = vrot.slane %v156_v4, 5  ;;  %v190_v8 = vsel %vm130_vm0, %v147_v0, %v170_v3  ;;  %s742_s26 = sld [smem:[#allocation3 + $0x3]]  ;;  %s161_s27 = scalar_lea.vmem [#allocation10], %s412_s20 }
  0x25   :  { %v162_v9 = vld [vmem:[%s161_s27] sm:$0x1]  ;;  %v179_v10 = vrot.slane %v159_v6, 4  ;;  %v191_v11 = vsel %vm132_vm1, %v190_v8, %v173_v5  ;;  %s745_s28 = sld [smem:[#allocation3 + $0x4]]  ;;  %s164_s29 = scalar_lea.vmem [#allocation10], %s413_s21 }
  0x26   :  { %v165_v12 = vld [vmem:[%s164_s29] sm:$0x1]  ;;  %v182_v13 = vrot.slane %v162_v9, 3  ;;  %v192_v14 = vsel %vm134_vm2, %v191_v11, %v176_v7  ;;  %s748_s30 = sld [smem:[#allocation3 + $0x5]]  ;;  %s167_s10 = scalar_lea.vmem [#allocation10], %s733_s0 }
  0x27   :  { %v168_v15 = vld [vmem:[%s167_s10] sm:$0x1]  ;;  %v185_v16 = vrot.slane %v165_v12, 2  ;;  %v193_v17 = vsel %vm136_vm3, %v192_v14, %v179_v10  ;;  %s752_s11 = sld [smem:[#allocation3 + $0x6]]  ;;  %s79_s4 = scalar_lea.vmem [#allocation7], %s735_s1 }
  0x28   :  { %v188_v18 = vrot.slane %v168_v15, 1  ;;  %v194_v19 = vsel %vm138_vm4, %v193_v17, %v182_v13  ;;  %v80_v20 = vld [vmem:[%s79_s4] sm:$0x1]  ;;  %s756_s12 = sld [smem:[#allocation3 + $0x7]]  ;;  %s83_s13 = scalar_lea.vmem [#allocation7], %s737_s2 }
  0x29   :  { %v195_v21 = vsel %vm140_vm5, %v194_v19, %v185_v16  ;;  %v84_v22 = vld [vmem:[%s83_s13] sm:$0x1]  ;;  %s760_s15 = sld [smem:[#allocation5]]  ;;  %s87_s5 = scalar_lea.vmem [#allocation7], %s739_s25 }
  0x2a   :  { %v196_v23 = vsel %vm142_vm6, %v195_v21, %v188_v18  ;;  %v88_v24 = vld [vmem:[%s87_s5] sm:$0x1]  ;;  %v110_v25 = vrot.slane %v84_v22, 7  ;;  %s764_s16 = sld [smem:[#allocation5 + $0x1]]  ;;  %s91_s17 = scalar_lea.vmem [#allocation7], %s742_s26 }
  0x2b   :  { %197 = vst [vmem:[#allocation13] sm:$0xff] %v196_v23  ;;  %v92_v26 = vld [vmem:[%s91_s17] sm:$0x1]  ;;  %v113_v27 = vrot.slane %v88_v24, 6  ;;  %s654_s19 = smov [#allocation12]   ;;  %s95_s21 = scalar_lea.vmem [#allocation7], %s745_s28 }
  0x2c   :  { %s767_s20 = sshll.u32 %s654_s19, 4  ;;  %v96_v28 = vld [vmem:[%s95_s21] sm:$0x1]  ;;  %v116_v29 = vrot.slane %v92_v26, 5  ;;  %v131_v30 = vsel %vm130_vm0, %v80_v20, %v110_v25  ;;  %s771_s22 = sld [smem:[#allocation5 + $0x2]]  ;;  %s310_s20 = int_to_ptr.vmem [resolvable:$true] %s767_s20 }
  0x2d   :  { %s99_s0 = scalar_lea.vmem [#allocation7], %s748_s30  ;;  %v119_v32 = vrot.slane %v96_v28, 4  ;;  %v133_v33 = vsel %vm132_vm1, %v131_v30, %v113_v27  ;;  %s775_s23 = sld [smem:[#allocation5 + $0x3]] }
  0x2e   :  { %v100_v31 = vld [vmem:[%s99_s0] sm:$0x1]  ;;  %s103_s1 = scalar_lea.vmem [#allocation7], %s752_s11  ;;  %v135_v36 = vsel %vm134_vm2, %v133_v33, %v116_v29  ;;  %s779_s7 = sld [smem:[#allocation5 + $0x4]] }
  0x2f   :  { %v104_v34 = vld [vmem:[%s103_s1] sm:$0x1]  ;;  %v122_v35 = vrot.slane %v100_v31, 3  ;;  %s107_s2 = scalar_lea.vmem [#allocation7], %s756_s12  ;;  %v137_v39 = vsel %vm136_vm3, %v135_v36, %v119_v32  ;;  %s419_s24 = sld [smem:[#allocation5 + $0x5]] }
  0x30   :  { %v108_v37 = vld [vmem:[%s107_s2] sm:$0x1]  ;;  %v125_v38 = vrot.slane %v104_v34, 2  ;;  %s784_s25 = sld [smem:[#allocation5 + $0x6]]  ;;  %s199_s3 = scalar_lea.vmem [#allocation10], %s760_s15 }
  0x31   :  { %v128_v40 = vrot.slane %v108_v37, 1  ;;  %v139_v41 = vsel %vm138_vm4, %v137_v39, %v122_v35  ;;  %v200_v43 = vld [vmem:[%s199_s3] sm:$0x1]  ;;  %s202_s26 = scalar_lea.vmem [#allocation10], %s764_s16  ;;  %s789_s27 = sld [smem:[#allocation5 + $0x7]] }
  0x32   :  { %v141_v42 = vsel %vm140_vm5, %v139_v41, %v125_v38  ;;  %v203_v44 = vld [vmem:[%s202_s26] sm:$0x1]  ;;  %s793_s28 = sld [smem:[#allocation6]]  ;;  %s205_s29 = scalar_lea.vmem [#allocation10], %s771_s22 }
  0x33   :  { %v143_v45 = vsel %vm142_vm6, %v141_v42, %v128_v40  ;;  %v223_v46 = vrot.slane %v203_v44, 7  ;;  %v206_v47 = vld [vmem:[%s205_s29] sm:$0x1]  ;;  %s796_s30 = sld [smem:[#allocation6 + $0x1]]  ;;  %s208_s10 = scalar_lea.vmem [#allocation10], %s775_s23 }
  0x34   :  { %144 = vst [vmem:[#allocation12] sm:$0xff] %v143_v45  ;;  %v209_v48 = vld [vmem:[%s208_s10] sm:$0x1]  ;;  %v226_v49 = vrot.slane %v206_v47, 6  ;;  %s800_s11 = sld [smem:[#allocation6 + $0x2]]  ;;  %s211_s4 = scalar_lea.vmem [#allocation10], %s779_s7 }
  0x35   :  { %v243_v50 = vsel %vm130_vm0, %v200_v43, %v223_v46  ;;  %v212_v51 = vld [vmem:[%s211_s4] sm:$0x1]  ;;  %v229_v52 = vrot.slane %v209_v48, 5  ;;  %s803_s12 = sld [smem:[#allocation6 + $0x3]]  ;;  %s214_s13 = scalar_lea.vmem [#allocation10], %s419_s24 }
  0x36   :  { %v215_v53 = vld [vmem:[%s214_s13] sm:$0x1]  ;;  %v232_v54 = vrot.slane %v212_v51, 4  ;;  %v244_v55 = vsel %vm132_vm1, %v243_v50, %v226_v49  ;;  %s806_s15 = sld [smem:[#allocation6 + $0x4]]  ;;  %s217_s5 = scalar_lea.vmem [#allocation10], %s784_s25 }
  0x37   :  { %v218_v56 = vld [vmem:[%s217_s5] sm:$0x1]  ;;  %v235_v57 = vrot.slane %v215_v53, 3  ;;  %v245_v58 = vsel %vm134_vm2, %v244_v55, %v229_v52  ;;  %s810_s16 = sld [smem:[#allocation6 + $0x5]]  ;;  %s220_s17 = scalar_lea.vmem [#allocation10], %s789_s27 }
  0x38   :  { %v221_v59 = vld [vmem:[%s220_s17] sm:$0x1]  ;;  %v238_v60 = vrot.slane %v218_v56, 2  ;;  %v246_v61 = vsel %vm136_vm3, %v245_v58, %v232_v54  ;;  %s814_s19 = sld [smem:[#allocation6 + $0x6]]  ;;  %s252_s22 = scalar_lea.vmem [#allocation10], %s793_s28 }
  0x39   :  { %v241_v62 = vrot.slane %v221_v59, 1  ;;  %v247_v63 = vsel %vm138_vm4, %v246_v61, %v235_v57  ;;  %s817_s21 = sld [smem:[#allocation6 + $0x7]]  ;;  %v253_v1 = vld [vmem:[%s252_s22] sm:$0x1]  ;;  %s255_s0 = scalar_lea.vmem [#allocation10], %s796_s30 }
  0x3a   :  { %v248_v0 = vsel %vm140_vm5, %v247_v63, %v238_v60  ;;  %v256_v2 = vld [vmem:[%s255_s0] sm:$0x1]  ;;  %s311_s7 = sshll.u32 %s853_s6, 4  ;;  %s258_s2 = scalar_lea.vmem [#allocation10], %s800_s11  ;;  %s312_s7 = int_to_ptr.hbm [resolvable:$true] %s311_s7 }
  0x3b   :  { %v249_v3 = vsel %vm142_vm6, %v248_v0, %v241_v62  ;;  %v259_v4 = vld [vmem:[%s258_s2] sm:$0x1]  ;;  %v276_v5 = vrot.slane %v256_v2, 7  ;;  %s261_s24 = scalar_lea.vmem [#allocation10], %s803_s12  ;;  %s655_s3 = smov [#allocation15]  }
  0x3c   :  { %250 = vst [vmem:[#allocation15] sm:$0xff] %v249_v3  ;;  %v262_v6 = vld [vmem:[%s261_s24] sm:$0x1]  ;;  %v279_v7 = vrot.slane %v259_v4, 6  ;;  %s264_s25 = scalar_lea.vmem [#allocation10], %s806_s15  ;;  %s331_s6 = sshll.u32 %s655_s3, 4  ;;  %s332_s6 = int_to_ptr.vmem [resolvable:$true] %s331_s6 }
  0x3d   :  { %v265_v8 = vld [vmem:[%s264_s25] sm:$0x1]  ;;  %v282_v9 = vrot.slane %v262_v6, 5  ;;  %v296_v10 = vsel %vm130_vm0, %v253_v1, %v276_v5  ;;  %s267_s26 = scalar_lea.vmem [#allocation10], %s810_s16  ;;  %s333_s30 = sshll.u32 %s855_s8, 4  ;;  %s334_s30 = int_to_ptr.hbm [resolvable:$true] %s333_s30 }
  0x3e   :  { %v268_v11 = vld [vmem:[%s267_s26] sm:$0x1]  ;;  %v285_v12 = vrot.slane %v265_v8, 4  ;;  %v297_v13 = vsel %vm132_vm1, %v296_v10, %v279_v7  ;;  %s270_s27 = scalar_lea.vmem [#allocation10], %s814_s19  ;;  %s656_s8 = smov [#allocation16]  }
  0x3f   :  { %v271_v14 = vld [vmem:[%s270_s27] sm:$0x1]  ;;  %v288_v15 = vrot.slane %v268_v11, 3  ;;  %v298_v16 = vsel %vm134_vm2, %v297_v13, %v282_v9  ;;  %s273_s10 = scalar_lea.vmem [#allocation10], %s817_s21  ;;  %s342_s11 = sshll.u32 %s656_s8, 4  ;;  %s343_s11 = int_to_ptr.vmem [resolvable:$true] %s342_s11 }
  0x40   :  { %v274_v17 = vld [vmem:[%s273_s10] sm:$0x1]  ;;  %v291_v18 = vrot.slane %v271_v14, 2  ;;  %v299_v19 = vsel %vm136_vm3, %v298_v16, %v285_v12  ;;  %325 = dma.vmem_to_hbm [thread:$0]  %s321_s14, 128, %s731_s18, [#allocation14]  }
  0x41   :  { %v294_v20 = vrot.slane %v274_v17, 1  ;;  %v300_v21 = vsel %vm138_vm4, %v299_v19, %v288_v15  ;;  %314 = dma.vmem_to_hbm [thread:$0]  %s310_s20, 128, %s312_s7, [#allocation9]  }
  0x42   :  { %v301_v22 = vsel %vm140_vm5, %v300_v21, %v291_v18  ;;  %336 = dma.vmem_to_hbm [thread:$0]  %s332_s6, 128, %s334_s30, [#allocation14]  }
  0x43   :  { %v302_v23 = vsel %vm142_vm6, %v301_v22, %v294_v20  ;;  %s344_s13 = sshll.u32 %s856_s9, 4  ;;  %s345_s13 = int_to_ptr.hbm [resolvable:$true] %s344_s13 }
  0x44   :  { %303 = vst [vmem:[#allocation16] sm:$0xff] %v302_v23 }
  0x45   :  { %347 = dma.vmem_to_hbm [thread:$0]  %s343_s11, 128, %s345_s13, [#allocation17]  }
  0x46   :  { %639 = dma.done.wait [#allocation9], 128  }
  0x47   :  { %640 = vsyncadd [#allocation9], 4294967168 }
  0x48   :  { %641 = dma.done.wait [#allocation14], 256  }
  0x49   :  { %642 = vsyncadd [#allocation14], 4294967040 }
  0x4a   :  { %643 = dma.done.wait [#allocation17], 128  }
  0x4b   :  { %644 = vsyncadd [#allocation17], 4294967168 }
  0x4c   :  { %364 = vsyncpa [#allocation8], 1 }
  0x4d   :  { %365 = vsyncpa [#allocation11], 1 }
  0x4e   :  { %366 = vsyncpa [#allocation9], 1 }
  0x4f   :  { %367 = vsyncpa [#allocation14], 1 }
  0x50   :  { %368 = vsyncpa [#allocation17], 1 }

</bundles_post_ra>
